<compile_context>
chip_gen: v7x
topology: tpu7x:2x2x1
jax: 0.10.0
libtpu: 0.0.40
codegen_flags: <defaults>
</compile_context>

<pallas_src>
import functools

import jax
import jax.numpy as jnp
from jax.experimental import pallas as pl
from jax.experimental.pallas import tpu as pltpu


def _label_smoothing_kernel(pred_ref, tgt_ref, out_ref, *,
                            confidence, off_value, n_total, block_rows):
    i = pl.program_id(0)

    @pl.when(i == 0)
    def _init():
        out_ref[...] = jnp.zeros_like(out_ref)

    pred = pred_ref[...].astype(jnp.float32)               # (TM, C)
    tgt = tgt_ref[...]                                      # (TM, 1) int32
    tm, c = pred.shape

    # Mask rows past the true batch size (ragged last tile): padded rows are
    # undefined data; zero them before any exp/max/sum.
    row = jax.lax.broadcasted_iota(jnp.int32, (tm, 1), 0)
    valid = (i * block_rows + row) < n_total                # (TM, 1) bool
    pred = jnp.where(valid, pred, 0.0)

    # Stable log-softmax pieces along the class (lane) axis.
    m = jnp.max(pred, axis=-1, keepdims=True)               # (TM, 1)
    shifted = pred - m                                       # (TM, C)
    lse = jnp.log(jnp.sum(jnp.exp(shifted), axis=-1, keepdims=True))  # (TM, 1)

    # sum_c logp = sum_c shifted - C * lse
    rowsum_logp = jnp.sum(shifted, axis=-1, keepdims=True) - c * lse  # (TM, 1)

    # logp at the target class: masked select-reduce (no scatter needed).
    col = jax.lax.broadcasted_iota(jnp.int32, (tm, c), 1)
    shifted_at_tgt = jnp.sum(jnp.where(col == tgt, shifted, 0.0),
                             axis=-1, keepdims=True)                  # (TM, 1)
    logp_at_tgt = shifted_at_tgt - lse

    # -sum_c true_dist * logp  without materializing true_dist.
    per_row = -(off_value * rowsum_logp
                + (confidence - off_value) * logp_at_tgt)             # (TM, 1)
    per_row = jnp.where(valid, per_row, 0.0)

    out_ref[...] += jnp.sum(per_row, axis=0, keepdims=True)           # (1, 1)

    @pl.when(i == pl.num_programs(0) - 1)
    def _finalize():
        out_ref[...] = out_ref[...] * (1.0 / n_total)


def _choose_block_rows(n, c, itemsize, budget_bytes=16 * 1024 * 1024):
    """Pick a row tile so the double-buffered pred tile fits a conservative
    VMEM budget (safe for v5e/v6e/v7x scoped limits)."""
    per_row = max(1, c * itemsize)
    tm = (budget_bytes // (2 * per_row)) // 16 * 16   # multiple of 16 (f32 & bf16 tiles)
    tm = max(8, min(tm, 1024))
    n_pad = ((n + 7) // 8) * 8
    return max(8, min(tm, n_pad))


def label_smoothing_loss(pred, target, *, classes, smoothing=0.0,
                         block_rows=None, vmem_limit_bytes=32 * 1024 * 1024):
    """pred: [N, C] float32/bfloat16, target: [N] int -> scalar float32."""
    n, c = pred.shape
    assert c == classes
    confidence = 1.0 - smoothing
    off_value = smoothing / (classes - 1)

    if block_rows is None:
        block_rows = _choose_block_rows(n, c, jnp.dtype(pred.dtype).itemsize)
    assert block_rows % 8 == 0

    grid = (pl.cdiv(n, block_rows),)
    tgt2d = target.astype(jnp.int32).reshape(n, 1)

    kernel = functools.partial(
        _label_smoothing_kernel,
        confidence=confidence, off_value=off_value,
        n_total=n, block_rows=block_rows,
    )

    out = pl.pallas_call(
        kernel,
        out_shape=jax.ShapeDtypeStruct((1, 1), jnp.float32),
        grid_spec=pltpu.PrefetchScalarGridSpec(
            num_scalar_prefetch=0,
            grid=grid,
            in_specs=[
                pl.BlockSpec((block_rows, c), lambda i: (i, 0)),
                pl.BlockSpec((block_rows, 1), lambda i: (i, 0)),
            ],
            out_specs=pl.BlockSpec((1, 1), lambda i: (0, 0)),
        ),
        compiler_params=pltpu.CompilerParams(
            dimension_semantics=("arbitrary",),   # reduction into shared (1,1) acc
            vmem_limit_bytes=vmem_limit_bytes,
        ),
    )(pred, tgt2d)
    return out[0, 0]


def _reference(pred, target, *, classes, smoothing):
    confidence = 1.0 - smoothing
    logp = jax.nn.log_softmax(pred.astype(jnp.float32), axis=-1)
    true_dist = jnp.full_like(logp, smoothing / (classes - 1))
    true_dist = true_dist.at[jnp.arange(pred.shape[0]), target].set(confidence)
    return jnp.mean(jnp.sum(-true_dist * logp, axis=-1))


if __name__ == "__main__":
    key = jax.random.PRNGKey(0)
    k1, k2 = jax.random.split(key)

    # Small shapes; N not a multiple of the tile so the ragged-tile mask and
    # the cross-tile accumulation are both exercised (grid = 2 steps).
    N, C = 26, 128
    smoothing = 0.1

    pred = jax.random.normal(k1, (N, C), dtype=jnp.float32)
    target = jax.random.randint(k2, (N,), 0, C, dtype=jnp.int32)

    loss = label_smoothing_loss(pred, target, classes=C, smoothing=smoothing,
                                block_rows=16)
    loss = jax.block_until_ready(loss)
    ref = _reference(pred, target, classes=C, smoothing=smoothing)
    assert jnp.allclose(loss, ref, atol=1e-5, rtol=1e-5), (loss, ref)

    # bf16 input path (halves HBM traffic; math stays f32 inside the kernel).
    pred_bf16 = pred.astype(jnp.bfloat16)
    loss_bf16 = label_smoothing_loss(pred_bf16, target, classes=C,
                                     smoothing=smoothing, block_rows=16)
    loss_bf16 = jax.block_until_ready(loss_bf16)
    ref_bf16 = _reference(pred_bf16, target, classes=C, smoothing=smoothing)
    assert jnp.allclose(loss_bf16, ref_bf16, atol=1e-4, rtol=1e-4), (loss_bf16, ref_bf16)

    print("KERNEL_OK")
</pallas_src>

<mosaic_0001>
module attributes {stable_mosaic.version = 11 : i64} {
  func.func @_label_smoothing_kernel(%arg0: i32, %arg1: memref<16x128xf32, #tpu.memory_space<vmem>>, %arg2: memref<16x1xi32, #tpu.memory_space<vmem>>, %arg3: memref<1x1xf32, #tpu.memory_space<vmem>>) attributes {dimension_semantics = [#tpu.dimension_semantics<arbitrary>], iteration_bounds = array<i64: 2>, scalar_prefetch = 0 : i64, scratch_operands = 0 : i64, tpu.core_type = #tpu.core_type<tc>, window_params = [{transform_indices = @transform_0, window_bounds = array<i64: 16, 128>}, {transform_indices = @transform_1, window_bounds = array<i64: 16, 1>}, {pipeline_mode = #tpu.pipeline_mode<synchronous>, transform_indices = @transform_2, window_bounds = array<i64: 1, 1>}]} {
    %c0_i32 = arith.constant 0 : i32
    %0 = arith.cmpi eq, %arg0, %c0_i32 : i32
    %1 = arith.extui %0 : i1 to i32
    %c0_i32_0 = arith.constant 0 : i32
    %2 = arith.cmpi ne, %1, %c0_i32_0 : i32
    scf.if %2 {
      %cst_20 = arith.constant 0.000000e+00 : f32
      %53 = vector.broadcast %cst_20 : f32 to vector<1x1xf32>
      %c0_21 = arith.constant 0 : index
      %c0_22 = arith.constant 0 : index
      %54 = vector.load %arg3[%c0_21, %c0_22] : memref<1x1xf32, #tpu.memory_space<vmem>>, vector<1x1xf32>
      tpu.vector_store %arg3[%c0_21, %c0_22], %53 {strides = array<i32>} : memref<1x1xf32, #tpu.memory_space<vmem>>, vector<1x1xf32>,
    } else {
    }
    %c0 = arith.constant 0 : index
    %c0_1 = arith.constant 0 : index
    %3 = vector.load %arg1[%c0, %c0_1] : memref<16x128xf32, #tpu.memory_space<vmem>>, vector<16x128xf32>
    %c0_2 = arith.constant 0 : index
    %c0_3 = arith.constant 0 : index
    %4 = vector.load %arg2[%c0_2, %c0_3] : memref<16x1xi32, #tpu.memory_space<vmem>>, vector<16x1xi32>
    %5 = tpu.iota {dimensions = array<i32: 0>} : vector<16x1xi32>
    %c16_i32 = arith.constant 16 : i32
    %6 = arith.muli %arg0, %c16_i32 : i32
    %7 = vector.broadcast %6 : i32 to vector<16x1xi32>
    %8 = arith.addi %7, %5 : vector<16x1xi32>
    %c26_i32 = arith.constant 26 : i32
    %9 = vector.broadcast %c26_i32 : i32 to vector<16x1xi32>
    %10 = arith.cmpi slt, %8, %9 : vector<16x1xi32>
    %cst = arith.constant 0.000000e+00 : f32
    %11 = vector.shape_cast %10 : vector<16x1xi1> to vector<16x1xi1>
    %12 = vector.broadcast %11 : vector<16x1xi1> to vector<16x128xi1>
    %13 = vector.broadcast %cst : f32 to vector<16x128xf32>
    %14 = arith.select %12, %3, %13 : vector<16x128xi1>, vector<16x128xf32>
    %cst_4 = arith.constant dense<0xFF800000> : vector<16xf32>
    %15 = vector.multi_reduction <maximumf>, %14, %cst_4 [1] : vector<16x128xf32> to vector<16xf32>
    %16 = vector.shape_cast %15 : vector<16xf32> to vector<16x1xf32>
    %17 = vector.broadcast %16 : vector<16x1xf32> to vector<16x128xf32>
    %18 = arith.subf %14, %17 : vector<16x128xf32>
    %19 = math.exp %18 : vector<16x128xf32>
    %cst_5 = arith.constant dense<0.000000e+00> : vector<16xf32>
    %20 = vector.multi_reduction <add>, %19, %cst_5 [1] : vector<16x128xf32> to vector<16xf32>
    %21 = vector.shape_cast %20 : vector<16xf32> to vector<16x1xf32>
    %22 = math.log %21 : vector<16x1xf32>
    %cst_6 = arith.constant dense<0.000000e+00> : vector<16xf32>
    %23 = vector.multi_reduction <add>, %18, %cst_6 [1] : vector<16x128xf32> to vector<16xf32>
    %24 = vector.shape_cast %23 : vector<16xf32> to vector<16x1xf32>
    %cst_7 = arith.constant 1.280000e+02 : f32
    %25 = vector.broadcast %cst_7 : f32 to vector<16x1xf32>
    %26 = arith.mulf %25, %22 : vector<16x1xf32>
    %27 = arith.subf %24, %26 : vector<16x1xf32>
    %28 = tpu.iota {dimensions = array<i32: 1>} : vector<16x128xi32>
    %29 = vector.broadcast %4 : vector<16x1xi32> to vector<16x128xi32>
    %30 = arith.cmpi eq, %28, %29 : vector<16x128xi32>
    %cst_8 = arith.constant 0.000000e+00 : f32
    %31 = vector.broadcast %cst_8 : f32 to vector<16x128xf32>
    %32 = arith.select %30, %18, %31 : vector<16x128xi1>, vector<16x128xf32>
    %cst_9 = arith.constant dense<0.000000e+00> : vector<16xf32>
    %33 = vector.multi_reduction <add>, %32, %cst_9 [1] : vector<16x128xf32> to vector<16xf32>
    %34 = vector.shape_cast %33 : vector<16xf32> to vector<16x1xf32>
    %35 = arith.subf %34, %22 : vector<16x1xf32>
    %cst_10 = arith.constant 7.87401571E-4 : f32
    %36 = vector.broadcast %cst_10 : f32 to vector<16x1xf32>
    %37 = arith.mulf %36, %27 : vector<16x1xf32>
    %cst_11 = arith.constant 0.899212599 : f32
    %38 = vector.broadcast %cst_11 : f32 to vector<16x1xf32>
    %39 = arith.mulf %38, %35 : vector<16x1xf32>
    %40 = arith.addf %37, %39 : vector<16x1xf32>
    %cst_12 = arith.constant 0.000000e+00 : f32
    %41 = vector.broadcast %cst_12 : f32 to vector<16x1xf32>
    %42 = arith.subf %41, %40 : vector<16x1xf32>
    %cst_13 = arith.constant 0.000000e+00 : f32
    %43 = vector.broadcast %cst_13 : f32 to vector<16x1xf32>
    %44 = arith.select %10, %42, %43 : vector<16x1xi1>, vector<16x1xf32>
    %c0_14 = arith.constant 0 : index
    %c0_15 = arith.constant 0 : index
    %45 = vector.load %arg3[%c0_14, %c0_15] : memref<1x1xf32, #tpu.memory_space<vmem>>, vector<1x1xf32>
    %cst_16 = arith.constant dense<0.000000e+00> : vector<1xf32>
    %46 = vector.multi_reduction <add>, %44, %cst_16 [0] : vector<16x1xf32> to vector<1xf32>
    %47 = vector.shape_cast %46 : vector<1xf32> to vector<1x1xf32>
    %48 = arith.addf %45, %47 : vector<1x1xf32>
    %c0_17 = arith.constant 0 : index
    %c0_18 = arith.constant 0 : index
    %49 = vector.load %arg3[%c0_17, %c0_18] : memref<1x1xf32, #tpu.memory_space<vmem>>, vector<1x1xf32>
    tpu.vector_store %arg3[%c0_17, %c0_18], %48 {strides = array<i32>} : memref<1x1xf32, #tpu.memory_space<vmem>>, vector<1x1xf32>,
    %c1_i32 = arith.constant 1 : i32
    %50 = arith.cmpi eq, %arg0, %c1_i32 : i32
    %51 = arith.extui %50 : i1 to i32
    %c0_i32_19 = arith.constant 0 : i32
    %52 = arith.cmpi ne, %51, %c0_i32_19 : i32
    scf.if %52 {
      %c0_20 = arith.constant 0 : index
      %c0_21 = arith.constant 0 : index
      %53 = vector.load %arg3[%c0_20, %c0_21] : memref<1x1xf32, #tpu.memory_space<vmem>>, vector<1x1xf32>
      %cst_22 = arith.constant 0.0384615399 : f32
      %54 = vector.broadcast %cst_22 : f32 to vector<1x1xf32>
      %55 = arith.mulf %53, %54 : vector<1x1xf32>
      %c0_23 = arith.constant 0 : index
      %c0_24 = arith.constant 0 : index
      %56 = vector.load %arg3[%c0_23, %c0_24] : memref<1x1xf32, #tpu.memory_space<vmem>>, vector<1x1xf32>
      tpu.vector_store %arg3[%c0_23, %c0_24], %55 {strides = array<i32>} : memref<1x1xf32, #tpu.memory_space<vmem>>, vector<1x1xf32>,
    } else {
    }
    return
  }
  func.func @transform_0(%arg0: i32) -> (i32, i32) {
    %c0_i32 = arith.constant 0 : i32
    %c0_i32_0 = arith.constant 0 : i32
    return %arg0, %c0_i32 : i32, i32
  }
  func.func @transform_1(%arg0: i32) -> (i32, i32) {
    %c0_i32 = arith.constant 0 : i32
    %c0_i32_0 = arith.constant 0 : i32
    return %arg0, %c0_i32 : i32, i32
  }
  func.func @transform_2(%arg0: i32) -> (i32, i32) {
    %c0_i32 = arith.constant 0 : i32
    %c0_i32_0 = arith.constant 0 : i32
    %c0_i32_1 = arith.constant 0 : i32
    return %c0_i32, %c0_i32_0 : i32, i32
  }
}

</mosaic_0001>

<bundles_post_ra>
// kernel: tpu_custom_call.1
= control target key start
LH: loop header
LB: loop body
LE: loop exit
PB: predicated region body
PF: predicated region fallthrough
CT: control target
= control target key end

     0   :  { %7 = vsyncpa [#allocation3], 0  ;;  %s407_s9 = smov 0   ;;  %s457_s0 = inlined_call_operand.vmem [shape: f32[26,128], index: 0, kind: input, shape index: {}]   ;;  %s458_s1 = inlined_call_operand.vmem [shape: s32[26,1], index: 1, kind: input, shape index: {}]   ;;  %s459_s2 = inlined_call_operand.hbm [shape: f32[1,1], index: 2, kind: output, shape index: {}]  }
   0x1 LB: > { %s413_s10 = sadd.s32 4294967295, %s387_s9   ;;  %p312_p0 = scmp.ge.s32.totalorder %s387_s9, 1  ;;  %s387_s9 = sphi %s407_s9, %s13_s9  }
   0x2   : > { %p120_p1 = scmp.lt.s32.totalorder %s387_s9, 3 }
   0x4   : > { %p121_p2 = pnand %p312_p0, %p120_p1 }
   0x5   : > { %s313_s11 = sshll.u32 (!%p121_p2), %s413_s10, 1  ;;  %p317_p4 = scmp.ne.s32.totalorder (!%p121_p2), %s413_s10, 0 }
   0x6   : > { %124 = sbr.rel (%p121_p2) target bundleno = 407 (0x197), region = 28  ;;  %p143_p3 = scmp.lt.s32.totalorder (!%p121_p2), %s313_s11, 3 }
   0xd   : > { %s461_s11 = smov (!%p143_p3, %s313_s11), 3  ;;  %157 = sbr.rel (%p317_p4) target bundleno = 20 (0x14), region = 32 }
   0xe   : > { %s314_s12 = sshll.u32 %s461_s11, 3  ;;  %vm158_vm0 = vcmask (!%p317_p4), 0   ;;  %v389_v0 = vmov (!%p317_p4), 0.0  }
   0xf   : > { %s146_s15 = scalar_lea.vmem %s457_s0, %s314_s12  ;;  %s152_s18 = scalar_lea.vmem %s458_s1, %s314_s12  ;;  %159 = vst.msk [vmem:[#allocation2] sm:$0x1] (!%p317_p4), %vm158_vm0, %v389_v0 }
  0x14 PF: > { %v164_v1 = vlaneseq  ;;  %s318_s19 = sshll.u32 %s413_s10, 4  ;;  %v162_v2 = vld [vmem:[%s152_s18] sm:$0xff]  ;;  %v390_v4 = vmov 0   ;;  %v163_v6 = vld [vmem:[%s152_s18 + $0x8] sm:$0xff]  ;;  %vm242_vm5 = vcmask 0   ;;  %p319_p5 = scmp.ne.s32.totalorder %s413_s10, 1 }
  0x15   : > { %v168_v3 = vstv %s318_s19  ;;  %341 = vset.pattern.permute.xlu1 %v390_v4  ;;  %342 = vset.pattern.permute.xlu0 %v390_v4  ;;  %v160_v7 = vld [vmem:[%s146_s15] sm:$0xff]  ;;  %v161_v10 = vld [vmem:[%s146_s15 + $0x8] sm:$0xff] }
  0x16   : > { %v165_v5 = vshrl.u32 %v164_v1, 7  ;;  %208 = vperm.xlu1 %341, %v162_v2   ;;  %v206_v23 = vand.u32 127, %v164_v1  ;;  %v233_v59 = vld [vmem:[#allocation2] sm:$0x1] }
  0x18   : > { %v169_v8 = vadd.s32 %v168_v3, %v165_v5  ;;  %v166_v9 = vadd.s32 8, %v165_v5 }
  0x1a   : > { %vm171_vm1 = vcmp.lt.s32.totalorder %v169_v8, 26  ;;  %v170_v11 = vadd.s32 %v168_v3, %v166_v9  ;;  %211 = vperm.xlu1 %341, %v163_v6  }
  0x1b   : > { %v177_v12 = vsel %vm171_vm1, %v160_v7, 0.0 }
  0x1c   : > { %179 = vmax.xlane.f32.xlu0 %v177_v12  ;;  %vm172_vm2 = vcmp.lt.s32.totalorder %v170_v11, 26 }
  0x1d   : > { %v178_v13 = vsel %vm172_vm2, %v161_v10, 0.0 }
  0x20   : > { %181 = vmax.xlane.f32.xlu0 %v178_v13 }
  0x95   : > { %v209_v22 = vpop.permute.xlu1 %208 }
  0x96   : > { %vm213_vm3 = vcmp.eq.s32.totalorder %v206_v23, %v209_v22 }
  0x99   : > { %v212_v24 = vpop.permute.xlu1 %211 }
  0x9a   : > { %vm214_vm4 = vcmp.eq.s32.totalorder %v206_v23, %v212_v24 }
  0xa9   : > { %v180_v14 = vpop.xlane.xlu0 %179 }
  0xaa   : > { %v183_v15 = vsub.f32 %v177_v12, %v180_v14 }
  0xac   : > { %v185_v16 = vmul.f32 1.442695, %v183_v15  ;;  %v215_v25 = vsel %vm213_vm3, %v183_v15, 0.0 }
  0xad   : > { %v182_v17 = vpop.xlane.xlu0 %181 }
  0xae   : > { %343 = vpow2.f32 %v185_v16  ;;  %v184_v18 = vsub.f32 %v178_v13, %v182_v17 }
  0xb0   : > { %v187_v19 = vmul.f32 1.442695, %v184_v18  ;;  %v216_v26 = vsel %vm214_vm4, %v184_v18, 0.0 }
  0xb2   : > { %345 = vpow2.f32 %v187_v19 }
  0xb8   : > { %v344_v20 = vpop.eup %343 }
  0xb9   : > { %189 = vadd.xlane.f32.xlu0 %v344_v20 }
  0xbc   : > { %v346_v21 = vpop.eup %345 }
  0xbd   : > { %197 = vadd.xlane.f32.xlu0 %v183_v15  ;;  %191 = vadd.xlane.f32.xlu1 %v346_v21 }
  0xc1   : > { %199 = vadd.xlane.f32.xlu0 %v184_v18 }
  0xc5   : > { %217 = vadd.xlane.f32.xlu0 %v215_v25 }
  0xc9   : > { %219 = vadd.xlane.f32.xlu0 %v216_v26 }
 0x146   : > { %v190_v27 = vpop.xlane.xlu0 %189 }
 0x147   : > { %347 = vlog2.f32 %v190_v27 }
 0x14a   : > { %v192_v28 = vpop.xlane.xlu1 %191  ;;  %v198_v29 = vpop.xlane.xlu0 %197 }
 0x14b   : > { %349 = vlog2.f32 %v192_v28 }
 0x14e   : > { %v200_v30 = vpop.xlane.xlu0 %199 }
 0x151   : > { %v348_v31 = vpop.eup %347 }
 0x152   : > { %v194_v32 = vmul.f32 0.6931472, %v348_v31  ;;  %v218_v33 = vpop.xlane.xlu0 %217 }
 0x154   : > { %v201_v34 = vmul.f32 128.0, %v194_v32  ;;  %v221_v35 = vsub.f32 %v218_v33, %v194_v32 }
 0x155   : > { %v350_v36 = vpop.eup %349 }
 0x156   : > { %v196_v37 = vmul.f32 0.6931472, %v350_v36  ;;  %v203_v38 = vsub.f32 %v198_v29, %v201_v34  ;;  %v220_v39 = vpop.xlane.xlu0 %219  ;;  %v225_v42 = vmul.f32 0.8992126, %v221_v35 }
 0x158   : > { %v223_v40 = vmul.f32 0.0007874016, %v203_v38  ;;  %v202_v41 = vmul.f32 128.0, %v196_v37  ;;  %v222_v43 = vsub.f32 %v220_v39, %v196_v37 }
 0x15a   : > { %v204_v44 = vsub.f32 %v200_v30, %v202_v41  ;;  %v227_v45 = vadd.f32 %v225_v42, %v223_v40  ;;  %v226_v47 = vmul.f32 0.8992126, %v222_v43 }
 0x15c   : > { %v224_v46 = vmul.f32 0.0007874016, %v204_v44  ;;  %v229_v48 = vsub.f32 0.0, %v227_v45 }
 0x15e   : > { %v228_v49 = vadd.f32 %v226_v47, %v224_v46  ;;  %v231_v51 = vsel %vm171_vm1, %v229_v48, 0.0 }
 0x160   : > { %v230_v50 = vsub.f32 0.0, %v228_v49 }
 0x162   : > { %v232_v52 = vsel %vm172_vm2, %v230_v50, 0.0 }
 0x163   : > { %v234_v53 = vadd.f32 %v232_v52, %v231_v51 }
 0x165   : > { %v235_v54 = vrot.slane %v234_v53, 4 }
 0x167   : > { %v236_v55 = vadd.f32 %v235_v54, %v234_v53 }
 0x169   : > { %v237_v56 = vrot.slane %v236_v55, 2 }
 0x16b   : > { %v238_v57 = vadd.f32 %v237_v56, %v236_v55 }
 0x16d   : > { %v239_v58 = vrot.slane %v238_v57, 1  ;;  %247 = sbr.rel (%p319_p5) target bundleno = 382 (0x17e), region = 36 }
 0x16f   : > { %v240_v60 = vadd.f32 %v239_v58, %v238_v57 }
 0x171   : > { %v241_v61 = vadd.f32 %v240_v60, %v233_v59 }
 0x173   : > { %243 = vst.msk [vmem:[#allocation2] sm:$0x1] %vm242_vm5, %v241_v61 }
 0x17a   : > { %v248_v62 = vld [vmem:[#allocation2] sm:$0x1] }
 0x17b   : > { %v249_v63 = vmul.f32 0.03846154, %v248_v62 }
 0x17d   : > { %250 = vst.msk [vmem:[#allocation2] sm:$0x1] %vm242_vm5, %v249_v63 }
 0x17e PF: > { %p328_p6 = scmp.eq.s32.totalorder %s413_s10, 1  ;;  %s391_s20 = smov [#allocation2]  }
 0x17f   : > { %s258_s21 = sshll.u32 %s391_s20, 4  ;;  %s259_s21 = int_to_ptr.vmem [resolvable:$true] %s258_s21 }
 0x180   : > { %s351_s22 = scalar_lea.vmem %s259_s21, 16  ;;  %s357_s23 = scalar_lea.vmem %s259_s21, 32 }
 0x181   : > { %p352_p7 = scmp.ne.s32.totalorder %s259_s21, %s351_s22  ;;  %p358_p10 = scmp.lt.s32.totalorder %s259_s21, %s259_s21 }
 0x182   : > { %p359_p11 = scmp.lt.s32.totalorder %s357_s23, %s351_s22 }
 0x183   : > { %p353_p8 = pnand %p352_p7, %p328_p6 }
 0x184   : > { %p360_p12 = por %p359_p11, %p358_p10 }
 0x185   : > { %p354_p9 = pneg %p353_p8 }
 0x187   : > { %p361_p13 = pnand %p360_p12, %p354_p9 }
 0x189   : > { %364 = shalt.err (!%p361_p13)
}
 0x18a   : > { %s365_s26 = scalar_lea.hbm %s459_s2, 16 }
 0x18b   : > { %p366_p0 = scmp.ne.s32.totalorder %s459_s2, %s365_s26  ;;  %p371_p3 = scmp.lt.u32.totalorder %s365_s26, %s459_s2 }
 0x18d   : > { %p367_p1 = pnand %p366_p0, %p328_p6 }
 0x18f   : > { %p368_p2 = pneg %p367_p1 }
 0x191   : > { %p373_p4 = pnand %p371_p3, %p368_p2 }
 0x193   : > { %376 = shalt.err (!%p373_p4)
}
 0x194   : > { %325 = dma.vmem_to_hbm [thread:$0]  (%p328_p6), %s259_s21, 16, %s459_s2, [#allocation3]  }
 0x195   : > { %382 = dma.done.wait (%p328_p6), [#allocation3], 16  }
 0x196   : > { %384 = vsyncadd (%p328_p6), [#allocation3], 4294967280 }
 0x197 PF: > { %s13_s9 = sadd.s32 1, %s387_s9  }
 0x198   : > { %p10_p5 = scmp.ge.s32.totalorder %s13_s9, 4  }
 0x19a   :  { %12 = sbr.rel (!%p10_p5) target bundleno = 1 (0x1), region = 66 }
 0x1a1   :  { %271 = vsyncpa [#allocation3], 1 }
 0x1a2   :  { %273 = vsyncpa [#allocation3 + $0x1], 1 }

</bundles_post_ra>
